<compile_context>
chip_gen: v6e
topology: v6e:2x2x1
jax: 0.10.0
libtpu: 0.0.40
codegen_flags: <defaults>
</compile_context>

<pallas_src>
import jax
import jax.numpy as jnp
from jax import lax
from jax.experimental import pallas as pl
from jax.experimental.pallas import tpu as pltpu

_FULL_UNROLL_MAX = 64  # fully unroll the recurrence when seq_length <= this


def _gru_decoder_kernel(h0_ref, whh_t_ref, b_rz_ref, b_ni_ref, b_nh_ref,
                        wfc_t_ref, bfc_ref, out_ref, h_scratch):
    """Single-invocation kernel: serial GRU rollout, then one batched fc projection.

    h0_ref    : (Bp, H)          f32           initial hidden (batch padded to mult of 8)
    whh_t_ref : (H, 3H)          bf16 or f32   W_hh transposed (gate order r,z,n)
    b_rz_ref  : (Bp, 2H)         f32           (b_ih + b_hh)[:2H], pre-broadcast over batch
    b_ni_ref  : (Bp, H)          f32           b_ih[2H:], pre-broadcast
    b_nh_ref  : (Bp, H)          f32           b_hh[2H:], pre-broadcast
    wfc_t_ref : (H, OUT_PAD)     f32           W_fc transposed, zero-padded to 128 lanes
    bfc_ref   : (1, OUT_PAD)     f32           b_fc, zero-padded
    out_ref   : (S*Bp, OUT_PAD)  f32           time-major, lane-dense output slab
    h_scratch : (S*Bp, H)        f32           hidden-state history (VMEM scratch)
    """
    Bp, H = h0_ref.shape
    S = h_scratch.shape[0] // Bp

    # All loop-invariant loads hoisted once; no broadcast_in_dim inside the loop body
    # (JAX does not CSE broadcasts, so any per-step broadcast would be re-emitted S times).
    whh_t = whh_t_ref[...]        # (H, 3H)  MXU operand (bf16 by default)
    b_rz = b_rz_ref[...]          # (Bp, 2H)
    b_ni = b_ni_ref[...]          # (Bp, H)
    b_nh = b_nh_ref[...]          # (Bp, H)
    mxu_dtype = whh_t.dtype

    def step(t, h):
        # Recurrent matmul on the MXU (f32 accumulation regardless of operand dtype).
        gh = jnp.dot(h.astype(mxu_dtype), whh_t,
                     preferred_element_type=jnp.float32)          # (Bp, 3H)
        # Fused r|z sigmoid on a single 128-lane slab (H=64), then split.
        rz = jax.nn.sigmoid(gh[:, : 2 * H] + b_rz)
        r = rz[:, :H]
        z = rz[:, H:]
        # n-gate: r multiplies only the hidden contribution (gh_n + b_hn); b_in adds on top.
        n = jnp.tanh(b_ni + r * (gh[:, 2 * H:] + b_nh))
        h_new = n + z * (h - n)                                   # == (1-z)*n + z*h
        row = t * Bp
        if not isinstance(row, int):
            row = pl.multiple_of(row, Bp)  # Bp is a multiple of 8 -> sublane-aligned store
        h_scratch[pl.ds(row, Bp), :] = h_new
        return h_new

    if S <= _FULL_UNROLL_MAX:
        # Static seq_length: full unroll -> cross-step scheduler visibility and every
        # scratch store is a static, sublane-aligned slice.
        h = h0_ref[...]
        for t in range(S):
            h = step(t, h)
    else:
        lax.fori_loop(0, S, step, h0_ref[...], unroll=8)

    # Single batched fc projection over all timesteps (hoisted out of the recurrence).
    hs = h_scratch[...]                                           # (S*Bp, H)
    y = jnp.dot(hs, wfc_t_ref[...], preferred_element_type=jnp.float32)
    out_ref[...] = y + bfc_ref[...]                               # lane-dense, unmasked vst


def position_decoder_forward(latent_A, params, seq_length, *, mxu_bf16=True):
    """JAX wrapper mirroring PositionDecoder.forward.

    latent_A : (B, H) float32
    returns  : (B, seq_length, output_size) float32

    mxu_bf16 (default True): use bf16 operands for the recurrent MXU matmul (single-pass,
    recommended on all chips); set False for bit-tight parity with the f32 reference.
    Gate math is f32 in both modes.
    """
    B, H = latent_A.shape
    out_size = params["w_fc"].shape[0]

    Bp = max(8, pl.cdiv(B, 8) * 8)                     # pad batch to sublane tile
    out_pad = max(128, pl.cdiv(out_size, 128) * 128)   # pad output lanes to 128

    mxu_dtype = jnp.bfloat16 if mxu_bf16 else jnp.float32
    whh_t = params["w_hh"].T.astype(mxu_dtype)                      # (H, 3H)

    b_ih = params["b_ih"].astype(jnp.float32)
    b_hh = params["b_hh"].astype(jnp.float32)
    # Pre-broadcast biases over the padded batch so the kernel loop has no broadcasts.
    b_rz = jnp.broadcast_to((b_ih[:2 * H] + b_hh[:2 * H])[None, :], (Bp, 2 * H))
    b_ni = jnp.broadcast_to(b_ih[2 * H:][None, :], (Bp, H))
    b_nh = jnp.broadcast_to(b_hh[2 * H:][None, :], (Bp, H))

    wfc_t = jnp.zeros((H, out_pad), jnp.float32)
    wfc_t = wfc_t.at[:, :out_size].set(params["w_fc"].T.astype(jnp.float32))
    bfc = jnp.zeros((1, out_pad), jnp.float32)
    bfc = bfc.at[:, :out_size].set(params["b_fc"].astype(jnp.float32))

    h0 = jnp.zeros((Bp, H), jnp.float32).at[:B].set(latent_A.astype(jnp.float32))

    # VMEM budget: resident inputs + output slab + hidden history, with headroom.
    mxu_bytes = 2 if mxu_bf16 else 4
    f32_elems = (Bp * H                       # h0
                 + Bp * 2 * H + 2 * Bp * H    # biases
                 + H * out_pad + out_pad      # fc weight + bias
                 + seq_length * Bp * out_pad  # output slab
                 + seq_length * Bp * H)       # hidden history scratch
    need_bytes = f32_elems * 4 + H * 3 * H * mxu_bytes
    vmem_limit = int(min(128 << 20, max(32 << 20, 2 * need_bytes + (4 << 20))))

    vmem = pl.BlockSpec(memory_space=pltpu.MemorySpace.VMEM)
    y = pl.pallas_call(
        _gru_decoder_kernel,
        out_shape=jax.ShapeDtypeStruct((seq_length * Bp, out_pad), jnp.float32),
        in_specs=[vmem] * 7,
        out_specs=vmem,
        scratch_shapes=[pltpu.VMEM((seq_length * Bp, H), jnp.float32)],
        compiler_params=pltpu.CompilerParams(vmem_limit_bytes=vmem_limit),
    )(h0, whh_t, b_rz, b_ni, b_nh, wfc_t, bfc)

    # (S*Bp, out_pad) -> (S, Bp, out_pad) -> drop pad rows/lanes -> batch_first.
    y = y.reshape(seq_length, Bp, out_pad)[:, :B, :out_size]
    return jnp.transpose(y, (1, 0, 2))


def init_params(key, latent_dim=64, output_size=3):
    """Deterministic parameter init (PyTorch-style U(-1/sqrt(H), 1/sqrt(H)))."""
    H = latent_dim
    k = 1.0 / jnp.sqrt(jnp.float32(H))
    keys = jax.random.split(key, 6)
    # W_ih exists in nn.GRU but contributes exactly zero here (all-zero inputs);
    # kept only for shape parity (unused by the kernel).
    w_ih = jax.random.uniform(keys[0], (3 * H, output_size), jnp.float32, -k, k)
    w_hh = jax.random.uniform(keys[1], (3 * H, H), jnp.float32, -k, k)
    b_ih = jax.random.uniform(keys[2], (3 * H,), jnp.float32, -k, k)
    b_hh = jax.random.uniform(keys[3], (3 * H,), jnp.float32, -k, k)
    w_fc = jax.random.uniform(keys[4], (output_size, H), jnp.float32, -k, k)
    b_fc = jax.random.uniform(keys[5], (output_size,), jnp.float32, -k, k)
    return {"w_ih": w_ih, "w_hh": w_hh, "b_ih": b_ih, "b_hh": b_hh,
            "w_fc": w_fc, "b_fc": b_fc}


def _reference_forward(latent_A, params, seq_length):
    """Pure-JAX reference in the original PyTorch formulation (sanity check)."""
    H = latent_A.shape[1]
    whh_t = params["w_hh"].T
    bih, bhh = params["b_ih"], params["b_hh"]
    wfc_t, bfc = params["w_fc"].T, params["b_fc"]

    def step(h, _):
        gh = h @ whh_t
        g = gh + bih + bhh
        r = jax.nn.sigmoid(g[:, 0:H])
        z = jax.nn.sigmoid(g[:, H:2 * H])
        n = jnp.tanh(bih[2 * H:] + r * (gh[:, 2 * H:] + bhh[2 * H:]))
        h_new = (1.0 - z) * n + z * h
        y = h_new @ wfc_t + bfc
        return h_new, y

    _, ys = lax.scan(step, latent_A, None, length=seq_length)   # (S, B, out)
    return jnp.transpose(ys, (1, 0, 2))


if __name__ == "__main__":
    B = 2
    LATENT_DIM = 64
    OUTPUT_SIZE = 3
    SEQ_LENGTH = 8

    key = jax.random.PRNGKey(0)
    k_params, k_latent = jax.random.split(key)
    params = init_params(k_params, LATENT_DIM, OUTPUT_SIZE)
    latent_A = jax.random.normal(k_latent, (B, LATENT_DIM), jnp.float32)

    ref = jax.block_until_ready(_reference_forward(latent_A, params, SEQ_LENGTH))

    # Default path: bf16 MXU operands for the recurrent matmul, f32 gate math.
    out = jax.block_until_ready(position_decoder_forward(latent_A, params, SEQ_LENGTH))
    assert out.shape == (B, SEQ_LENGTH, OUTPUT_SIZE)
    assert float(jnp.max(jnp.abs(out - ref))) < 5e-2

    # f32-MXU escape hatch -- bit-tight against the reference.
    out_f32 = jax.block_until_ready(
        position_decoder_forward(latent_A, params, SEQ_LENGTH, mxu_bf16=False))
    assert out_f32.shape == (B, SEQ_LENGTH, OUTPUT_SIZE)
    assert jnp.allclose(out_f32, ref, atol=1e-4, rtol=1e-4)

    print("KERNEL_OK")
</pallas_src>

<mosaic_0001>
module attributes {stable_mosaic.version = 11 : i64} {
  func.func @_gru_decoder_kernel(%arg0: memref<8x64xf32, #tpu.memory_space<vmem>>, %arg1: memref<64x192xbf16, #tpu.memory_space<vmem>>, %arg2: memref<8x128xf32, #tpu.memory_space<vmem>>, %arg3: memref<8x64xf32, #tpu.memory_space<vmem>>, %arg4: memref<8x64xf32, #tpu.memory_space<vmem>>, %arg5: memref<64x128xf32, #tpu.memory_space<vmem>>, %arg6: memref<1x128xf32, #tpu.memory_space<vmem>>, %arg7: memref<64x128xf32, #tpu.memory_space<vmem>>, %arg8: memref<64x64xf32, #tpu.memory_space<vmem>>) attributes {dimension_semantics = [], scalar_prefetch = 0 : i64, scratch_operands = 1 : i64, tpu.core_type = #tpu.core_type<tc>} {
    %c0 = arith.constant 0 : index
    %c0_0 = arith.constant 0 : index
    %0 = vector.load %arg1[%c0, %c0_0] : memref<64x192xbf16, #tpu.memory_space<vmem>>, vector<64x192xbf16>
    %c0_1 = arith.constant 0 : index
    %c0_2 = arith.constant 0 : index
    %1 = vector.load %arg2[%c0_1, %c0_2] : memref<8x128xf32, #tpu.memory_space<vmem>>, vector<8x128xf32>
    %c0_3 = arith.constant 0 : index
    %c0_4 = arith.constant 0 : index
    %2 = vector.load %arg3[%c0_3, %c0_4] : memref<8x64xf32, #tpu.memory_space<vmem>>, vector<8x64xf32>
    %c0_5 = arith.constant 0 : index
    %c0_6 = arith.constant 0 : index
    %3 = vector.load %arg4[%c0_5, %c0_6] : memref<8x64xf32, #tpu.memory_space<vmem>>, vector<8x64xf32>
    %c0_7 = arith.constant 0 : index
    %c0_8 = arith.constant 0 : index
    %4 = vector.load %arg0[%c0_7, %c0_8] : memref<8x64xf32, #tpu.memory_space<vmem>>, vector<8x64xf32>
    %5 = arith.truncf %4 : vector<8x64xf32> to vector<8x64xbf16>
    %cst = arith.constant dense<0.000000e+00> : vector<8x192xf32>
    %6 = tpu.matmul %5, %0, %cst {dimension_numbers = #tpu.dot_dimension_numbers<[1], [0], [0], [1], [0, 0, 1, 1], [], []>} : vector<8x64xbf16>, vector<64x192xbf16>, vector<8x192xf32> -> vector<8x192xf32>
    %7 = vector.extract_strided_slice %6 {offsets = [0, 0], sizes = [8, 128], strides = [1, 1]} : vector<8x192xf32> to vector<8x128xf32>
    %8 = arith.addf %7, %1 : vector<8x128xf32>
    %9 = arith.negf %8 : vector<8x128xf32>
    %10 = math.exp %9 : vector<8x128xf32>
    %cst_9 = arith.constant 1.000000e+00 : f32
    %11 = vector.broadcast %cst_9 : f32 to vector<8x128xf32>
    %12 = arith.addf %11, %10 : vector<8x128xf32>
    %13 = arith.divf %11, %12 : vector<8x128xf32>
    %14 = vector.extract_strided_slice %13 {offsets = [0, 0], sizes = [8, 64], strides = [1, 1]} : vector<8x128xf32> to vector<8x64xf32>
    %15 = vector.extract_strided_slice %13 {offsets = [0, 64], sizes = [8, 64], strides = [1, 1]} : vector<8x128xf32> to vector<8x64xf32>
    %16 = vector.extract_strided_slice %6 {offsets = [0, 128], sizes = [8, 64], strides = [1, 1]} : vector<8x192xf32> to vector<8x64xf32>
    %17 = arith.addf %16, %3 : vector<8x64xf32>
    %18 = arith.mulf %14, %17 : vector<8x64xf32>
    %19 = arith.addf %2, %18 : vector<8x64xf32>
    %20 = math.tanh %19 : vector<8x64xf32>
    %21 = arith.subf %4, %20 : vector<8x64xf32>
    %22 = arith.mulf %15, %21 : vector<8x64xf32>
    %23 = arith.addf %20, %22 : vector<8x64xf32>
    %c0_10 = arith.constant 0 : index
    %c0_11 = arith.constant 0 : index
    %24 = vector.load %arg8[%c0_10, %c0_11] : memref<64x64xf32, #tpu.memory_space<vmem>>, vector<8x64xf32>
    tpu.vector_store %arg8[%c0_10, %c0_11], %23 {strides = array<i32>} : memref<64x64xf32, #tpu.memory_space<vmem>>, vector<8x64xf32>,
    %25 = arith.truncf %23 : vector<8x64xf32> to vector<8x64xbf16>
    %cst_12 = arith.constant dense<0.000000e+00> : vector<8x192xf32>
    %26 = tpu.matmul %25, %0, %cst_12 {dimension_numbers = #tpu.dot_dimension_numbers<[1], [0], [0], [1], [0, 0, 1, 1], [], []>} : vector<8x64xbf16>, vector<64x192xbf16>, vector<8x192xf32> -> vector<8x192xf32>
    %27 = vector.extract_strided_slice %26 {offsets = [0, 0], sizes = [8, 128], strides = [1, 1]} : vector<8x192xf32> to vector<8x128xf32>
    %28 = arith.addf %27, %1 : vector<8x128xf32>
    %29 = arith.negf %28 : vector<8x128xf32>
    %30 = math.exp %29 : vector<8x128xf32>
    %cst_13 = arith.constant 1.000000e+00 : f32
    %31 = vector.broadcast %cst_13 : f32 to vector<8x128xf32>
    %32 = arith.addf %31, %30 : vector<8x128xf32>
    %33 = arith.divf %31, %32 : vector<8x128xf32>
    %34 = vector.extract_strided_slice %33 {offsets = [0, 0], sizes = [8, 64], strides = [1, 1]} : vector<8x128xf32> to vector<8x64xf32>
    %35 = vector.extract_strided_slice %33 {offsets = [0, 64], sizes = [8, 64], strides = [1, 1]} : vector<8x128xf32> to vector<8x64xf32>
    %36 = vector.extract_strided_slice %26 {offsets = [0, 128], sizes = [8, 64], strides = [1, 1]} : vector<8x192xf32> to vector<8x64xf32>
    %37 = arith.addf %36, %3 : vector<8x64xf32>
    %38 = arith.mulf %34, %37 : vector<8x64xf32>
    %39 = arith.addf %2, %38 : vector<8x64xf32>
    %40 = math.tanh %39 : vector<8x64xf32>
    %41 = arith.subf %23, %40 : vector<8x64xf32>
    %42 = arith.mulf %35, %41 : vector<8x64xf32>
    %43 = arith.addf %40, %42 : vector<8x64xf32>
    %c8 = arith.constant 8 : index
    %c0_14 = arith.constant 0 : index
    %44 = vector.load %arg8[%c8, %c0_14] : memref<64x64xf32, #tpu.memory_space<vmem>>, vector<8x64xf32>
    tpu.vector_store %arg8[%c8, %c0_14], %43 {strides = array<i32>} : memref<64x64xf32, #tpu.memory_space<vmem>>, vector<8x64xf32>,
    %45 = arith.truncf %43 : vector<8x64xf32> to vector<8x64xbf16>
    %cst_15 = arith.constant dense<0.000000e+00> : vector<8x192xf32>
    %46 = tpu.matmul %45, %0, %cst_15 {dimension_numbers = #tpu.dot_dimension_numbers<[1], [0], [0], [1], [0, 0, 1, 1], [], []>} : vector<8x64xbf16>, vector<64x192xbf16>, vector<8x192xf32> -> vector<8x192xf32>
    %47 = vector.extract_strided_slice %46 {offsets = [0, 0], sizes = [8, 128], strides = [1, 1]} : vector<8x192xf32> to vector<8x128xf32>
    %48 = arith.addf %47, %1 : vector<8x128xf32>
    %49 = arith.negf %48 : vector<8x128xf32>
    %50 = math.exp %49 : vector<8x128xf32>
    %cst_16 = arith.constant 1.000000e+00 : f32
    %51 = vector.broadcast %cst_16 : f32 to vector<8x128xf32>
    %52 = arith.addf %51, %50 : vector<8x128xf32>
    %53 = arith.divf %51, %52 : vector<8x128xf32>
    %54 = vector.extract_strided_slice %53 {offsets = [0, 0], sizes = [8, 64], strides = [1, 1]} : vector<8x128xf32> to vector<8x64xf32>
    %55 = vector.extract_strided_slice %53 {offsets = [0, 64], sizes = [8, 64], strides = [1, 1]} : vector<8x128xf32> to vector<8x64xf32>
    %56 = vector.extract_strided_slice %46 {offsets = [0, 128], sizes = [8, 64], strides = [1, 1]} : vector<8x192xf32> to vector<8x64xf32>
    %57 = arith.addf %56, %3 : vector<8x64xf32>
    %58 = arith.mulf %54, %57 : vector<8x64xf32>
    %59 = arith.addf %2, %58 : vector<8x64xf32>
    %60 = math.tanh %59 : vector<8x64xf32>
    %61 = arith.subf %43, %60 : vector<8x64xf32>
    %62 = arith.mulf %55, %61 : vector<8x64xf32>
    %63 = arith.addf %60, %62 : vector<8x64xf32>
    %c16 = arith.constant 16 : index
    %c0_17 = arith.constant 0 : index
    %64 = vector.load %arg8[%c16, %c0_17] : memref<64x64xf32, #tpu.memory_space<vmem>>, vector<8x64xf32>
    tpu.vector_store %arg8[%c16, %c0_17], %63 {strides = array<i32>} : memref<64x64xf32, #tpu.memory_space<vmem>>, vector<8x64xf32>,
    %65 = arith.truncf %63 : vector<8x64xf32> to vector<8x64xbf16>
    %cst_18 = arith.constant dense<0.000000e+00> : vector<8x192xf32>
    %66 = tpu.matmul %65, %0, %cst_18 {dimension_numbers = #tpu.dot_dimension_numbers<[1], [0], [0], [1], [0, 0, 1, 1], [], []>} : vector<8x64xbf16>, vector<64x192xbf16>, vector<8x192xf32> -> vector<8x192xf32>
    %67 = vector.extract_strided_slice %66 {offsets = [0, 0], sizes = [8, 128], strides = [1, 1]} : vector<8x192xf32> to vector<8x128xf32>
    %68 = arith.addf %67, %1 : vector<8x128xf32>
    %69 = arith.negf %68 : vector<8x128xf32>
    %70 = math.exp %69 : vector<8x128xf32>
    %cst_19 = arith.constant 1.000000e+00 : f32
    %71 = vector.broadcast %cst_19 : f32 to vector<8x128xf32>
    %72 = arith.addf %71, %70 : vector<8x128xf32>
    %73 = arith.divf %71, %72 : vector<8x128xf32>
    %74 = vector.extract_strided_slice %73 {offsets = [0, 0], sizes = [8, 64], strides = [1, 1]} : vector<8x128xf32> to vector<8x64xf32>
    %75 = vector.extract_strided_slice %73 {offsets = [0, 64], sizes = [8, 64], strides = [1, 1]} : vector<8x128xf32> to vector<8x64xf32>
    %76 = vector.extract_strided_slice %66 {offsets = [0, 128], sizes = [8, 64], strides = [1, 1]} : vector<8x192xf32> to vector<8x64xf32>
    %77 = arith.addf %76, %3 : vector<8x64xf32>
    %78 = arith.mulf %74, %77 : vector<8x64xf32>
    %79 = arith.addf %2, %78 : vector<8x64xf32>
    %80 = math.tanh %79 : vector<8x64xf32>
    %81 = arith.subf %63, %80 : vector<8x64xf32>
    %82 = arith.mulf %75, %81 : vector<8x64xf32>
    %83 = arith.addf %80, %82 : vector<8x64xf32>
    %c24 = arith.constant 24 : index
    %c0_20 = arith.constant 0 : index
    %84 = vector.load %arg8[%c24, %c0_20] : memref<64x64xf32, #tpu.memory_space<vmem>>, vector<8x64xf32>
    tpu.vector_store %arg8[%c24, %c0_20], %83 {strides = array<i32>} : memref<64x64xf32, #tpu.memory_space<vmem>>, vector<8x64xf32>,
    %85 = arith.truncf %83 : vector<8x64xf32> to vector<8x64xbf16>
    %cst_21 = arith.constant dense<0.000000e+00> : vector<8x192xf32>
    %86 = tpu.matmul %85, %0, %cst_21 {dimension_numbers = #tpu.dot_dimension_numbers<[1], [0], [0], [1], [0, 0, 1, 1], [], []>} : vector<8x64xbf16>, vector<64x192xbf16>, vector<8x192xf32> -> vector<8x192xf32>
    %87 = vector.extract_strided_slice %86 {offsets = [0, 0], sizes = [8, 128], strides = [1, 1]} : vector<8x192xf32> to vector<8x128xf32>
    %88 = arith.addf %87, %1 : vector<8x128xf32>
    %89 = arith.negf %88 : vector<8x128xf32>
    %90 = math.exp %89 : vector<8x128xf32>
    %cst_22 = arith.constant 1.000000e+00 : f32
    %91 = vector.broadcast %cst_22 : f32 to vector<8x128xf32>
    %92 = arith.addf %91, %90 : vector<8x128xf32>
    %93 = arith.divf %91, %92 : vector<8x128xf32>
    %94 = vector.extract_strided_slice %93 {offsets = [0, 0], sizes = [8, 64], strides = [1, 1]} : vector<8x128xf32> to vector<8x64xf32>
    %95 = vector.extract_strided_slice %93 {offsets = [0, 64], sizes = [8, 64], strides = [1, 1]} : vector<8x128xf32> to vector<8x64xf32>
    %96 = vector.extract_strided_slice %86 {offsets = [0, 128], sizes = [8, 64], strides = [1, 1]} : vector<8x192xf32> to vector<8x64xf32>
    %97 = arith.addf %96, %3 : vector<8x64xf32>
    %98 = arith.mulf %94, %97 : vector<8x64xf32>
    %99 = arith.addf %2, %98 : vector<8x64xf32>
    %100 = math.tanh %99 : vector<8x64xf32>
    %101 = arith.subf %83, %100 : vector<8x64xf32>
    %102 = arith.mulf %95, %101 : vector<8x64xf32>
    %103 = arith.addf %100, %102 : vector<8x64xf32>
    %c32 = arith.constant 32 : index
    %c0_23 = arith.constant 0 : index
    %104 = vector.load %arg8[%c32, %c0_23] : memref<64x64xf32, #tpu.memory_space<vmem>>, vector<8x64xf32>
    tpu.vector_store %arg8[%c32, %c0_23], %103 {strides = array<i32>} : memref<64x64xf32, #tpu.memory_space<vmem>>, vector<8x64xf32>,
    %105 = arith.truncf %103 : vector<8x64xf32> to vector<8x64xbf16>
    %cst_24 = arith.constant dense<0.000000e+00> : vector<8x192xf32>
    %106 = tpu.matmul %105, %0, %cst_24 {dimension_numbers = #tpu.dot_dimension_numbers<[1], [0], [0], [1], [0, 0, 1, 1], [], []>} : vector<8x64xbf16>, vector<64x192xbf16>, vector<8x192xf32> -> vector<8x192xf32>
    %107 = vector.extract_strided_slice %106 {offsets = [0, 0], sizes = [8, 128], strides = [1, 1]} : vector<8x192xf32> to vector<8x128xf32>
    %108 = arith.addf %107, %1 : vector<8x128xf32>
    %109 = arith.negf %108 : vector<8x128xf32>
    %110 = math.exp %109 : vector<8x128xf32>
    %cst_25 = arith.constant 1.000000e+00 : f32
    %111 = vector.broadcast %cst_25 : f32 to vector<8x128xf32>
    %112 = arith.addf %111, %110 : vector<8x128xf32>
    %113 = arith.divf %111, %112 : vector<8x128xf32>
    %114 = vector.extract_strided_slice %113 {offsets = [0, 0], sizes = [8, 64], strides = [1, 1]} : vector<8x128xf32> to vector<8x64xf32>
    %115 = vector.extract_strided_slice %113 {offsets = [0, 64], sizes = [8, 64], strides = [1, 1]} : vector<8x128xf32> to vector<8x64xf32>
    %116 = vector.extract_strided_slice %106 {offsets = [0, 128], sizes = [8, 64], strides = [1, 1]} : vector<8x192xf32> to vector<8x64xf32>
    %117 = arith.addf %116, %3 : vector<8x64xf32>
    %118 = arith.mulf %114, %117 : vector<8x64xf32>
    %119 = arith.addf %2, %118 : vector<8x64xf32>
    %120 = math.tanh %119 : vector<8x64xf32>
    %121 = arith.subf %103, %120 : vector<8x64xf32>
    %122 = arith.mulf %115, %121 : vector<8x64xf32>
    %123 = arith.addf %120, %122 : vector<8x64xf32>
    %c40 = arith.constant 40 : index
    %c0_26 = arith.constant 0 : index
    %124 = vector.load %arg8[%c40, %c0_26] : memref<64x64xf32, #tpu.memory_space<vmem>>, vector<8x64xf32>
    tpu.vector_store %arg8[%c40, %c0_26], %123 {strides = array<i32>} : memref<64x64xf32, #tpu.memory_space<vmem>>, vector<8x64xf32>,
    %125 = arith.truncf %123 : vector<8x64xf32> to vector<8x64xbf16>
    %cst_27 = arith.constant dense<0.000000e+00> : vector<8x192xf32>
    %126 = tpu.matmul %125, %0, %cst_27 {dimension_numbers = #tpu.dot_dimension_numbers<[1], [0], [0], [1], [0, 0, 1, 1], [], []>} : vector<8x64xbf16>, vector<64x192xbf16>, vector<8x192xf32> -> vector<8x192xf32>
    %127 = vector.extract_strided_slice %126 {offsets = [0, 0], sizes = [8, 128], strides = [1, 1]} : vector<8x192xf32> to vector<8x128xf32>
    %128 = arith.addf %127, %1 : vector<8x128xf32>
    %129 = arith.negf %128 : vector<8x128xf32>
    %130 = math.exp %129 : vector<8x128xf32>
    %cst_28 = arith.constant 1.000000e+00 : f32
    %131 = vector.broadcast %cst_28 : f32 to vector<8x128xf32>
    %132 = arith.addf %131, %130 : vector<8x128xf32>
    %133 = arith.divf %131, %132 : vector<8x128xf32>
    %134 = vector.extract_strided_slice %133 {offsets = [0, 0], sizes = [8, 64], strides = [1, 1]} : vector<8x128xf32> to vector<8x64xf32>
    %135 = vector.extract_strided_slice %133 {offsets = [0, 64], sizes = [8, 64], strides = [1, 1]} : vector<8x128xf32> to vector<8x64xf32>
    %136 = vector.extract_strided_slice %126 {offsets = [0, 128], sizes = [8, 64], strides = [1, 1]} : vector<8x192xf32> to vector<8x64xf32>
    %137 = arith.addf %136, %3 : vector<8x64xf32>
    %138 = arith.mulf %134, %137 : vector<8x64xf32>
    %139 = arith.addf %2, %138 : vector<8x64xf32>
    %140 = math.tanh %139 : vector<8x64xf32>
    %141 = arith.subf %123, %140 : vector<8x64xf32>
    %142 = arith.mulf %135, %141 : vector<8x64xf32>
    %143 = arith.addf %140, %142 : vector<8x64xf32>
    %c48 = arith.constant 48 : index
    %c0_29 = arith.constant 0 : index
    %144 = vector.load %arg8[%c48, %c0_29] : memref<64x64xf32, #tpu.memory_space<vmem>>, vector<8x64xf32>
    tpu.vector_store %arg8[%c48, %c0_29], %143 {strides = array<i32>} : memref<64x64xf32, #tpu.memory_space<vmem>>, vector<8x64xf32>,
    %145 = arith.truncf %143 : vector<8x64xf32> to vector<8x64xbf16>
    %cst_30 = arith.constant dense<0.000000e+00> : vector<8x192xf32>
    %146 = tpu.matmul %145, %0, %cst_30 {dimension_numbers = #tpu.dot_dimension_numbers<[1], [0], [0], [1], [0, 0, 1, 1], [], []>} : vector<8x64xbf16>, vector<64x192xbf16>, vector<8x192xf32> -> vector<8x192xf32>
    %147 = vector.extract_strided_slice %146 {offsets = [0, 0], sizes = [8, 128], strides = [1, 1]} : vector<8x192xf32> to vector<8x128xf32>
    %148 = arith.addf %147, %1 : vector<8x128xf32>
    %149 = arith.negf %148 : vector<8x128xf32>
    %150 = math.exp %149 : vector<8x128xf32>
    %cst_31 = arith.constant 1.000000e+00 : f32
    %151 = vector.broadcast %cst_31 : f32 to vector<8x128xf32>
    %152 = arith.addf %151, %150 : vector<8x128xf32>
    %153 = arith.divf %151, %152 : vector<8x128xf32>
    %154 = vector.extract_strided_slice %153 {offsets = [0, 0], sizes = [8, 64], strides = [1, 1]} : vector<8x128xf32> to vector<8x64xf32>
    %155 = vector.extract_strided_slice %153 {offsets = [0, 64], sizes = [8, 64], strides = [1, 1]} : vector<8x128xf32> to vector<8x64xf32>
    %156 = vector.extract_strided_slice %146 {offsets = [0, 128], sizes = [8, 64], strides = [1, 1]} : vector<8x192xf32> to vector<8x64xf32>
    %157 = arith.addf %156, %3 : vector<8x64xf32>
    %158 = arith.mulf %154, %157 : vector<8x64xf32>
    %159 = arith.addf %2, %158 : vector<8x64xf32>
    %160 = math.tanh %159 : vector<8x64xf32>
    %161 = arith.subf %143, %160 : vector<8x64xf32>
    %162 = arith.mulf %155, %161 : vector<8x64xf32>
    %163 = arith.addf %160, %162 : vector<8x64xf32>
    %c56 = arith.constant 56 : index
    %c0_32 = arith.constant 0 : index
    %164 = vector.load %arg8[%c56, %c0_32] : memref<64x64xf32, #tpu.memory_space<vmem>>, vector<8x64xf32>
    tpu.vector_store %arg8[%c56, %c0_32], %163 {strides = array<i32>} : memref<64x64xf32, #tpu.memory_space<vmem>>, vector<8x64xf32>,
    %c0_33 = arith.constant 0 : index
    %c0_34 = arith.constant 0 : index
    %165 = vector.load %arg8[%c0_33, %c0_34] : memref<64x64xf32, #tpu.memory_space<vmem>>, vector<64x64xf32>
    %c0_35 = arith.constant 0 : index
    %c0_36 = arith.constant 0 : index
    %166 = vector.load %arg5[%c0_35, %c0_36] : memref<64x128xf32, #tpu.memory_space<vmem>>, vector<64x128xf32>
    %cst_37 = arith.constant dense<0.000000e+00> : vector<64x128xf32>
    %167 = tpu.matmul %165, %166, %cst_37 {dimension_numbers = #tpu.dot_dimension_numbers<[1], [0], [0], [1], [0, 0, 1, 1], [], []>} : vector<64x64xf32>, vector<64x128xf32>, vector<64x128xf32> -> vector<64x128xf32>
    %c0_38 = arith.constant 0 : index
    %c0_39 = arith.constant 0 : index
    %168 = vector.load %arg6[%c0_38, %c0_39] : memref<1x128xf32, #tpu.memory_space<vmem>>, vector<1x128xf32>
    %169 = vector.broadcast %168 : vector<1x128xf32> to vector<64x128xf32>
    %170 = arith.addf %167, %169 : vector<64x128xf32>
    %c0_40 = arith.constant 0 : index
    %c0_41 = arith.constant 0 : index
    %171 = vector.load %arg7[%c0_40, %c0_41] : memref<64x128xf32, #tpu.memory_space<vmem>>, vector<64x128xf32>
    tpu.vector_store %arg7[%c0_40, %c0_41], %170 {strides = array<i32>} : memref<64x128xf32, #tpu.memory_space<vmem>>, vector<64x128xf32>,
    return
  }
}

</mosaic_0001>

<bundles_post_ra>
// kernel: tpu_custom_call.1
= control target key start
LH: loop header
LB: loop body
LE: loop exit
PB: predicated region body
PF: predicated region fallthrough
CT: control target
= control target key end

     0   :  { %12 = vsyncpa [#allocation4], 0  ;;  %s1435_s0 = inlined_call_operand.hbm [shape: f32[8,64], index: 0, kind: input, shape index: {}]   ;;  %s1436_s1 = inlined_call_operand.hbm [shape: bf16[64,192], index: 1, kind: input, shape index: {}]   ;;  %s1437_s2 = inlined_call_operand.hbm [shape: f32[8,128], index: 2, kind: input, shape index: {}]   ;;  %s1438_s3 = inlined_call_operand.hbm [shape: f32[8,64], index: 3, kind: input, shape index: {}]   ;;  %s1439_s4 = inlined_call_operand.hbm [shape: f32[8,64], index: 4, kind: input, shape index: {}]   ;;  %s1440_s5 = inlined_call_operand.hbm [shape: f32[64,128], index: 5, kind: input, shape index: {}]   ;;  %s1441_s6 = inlined_call_operand.vmem [shape: f32[1,128], index: 6, kind: input, shape index: {}]   ;;  %s1442_s7 = inlined_call_operand.hbm [shape: f32[64,128], index: 7, kind: output, shape index: {}]  }
   0x1   :  { %13 = vsyncpa [#allocation7], 0 }
   0x2   :  { %14 = vsyncpa [#allocation10], 0 }
   0x3   :  { %15 = vsyncpa [#allocation13], 0 }
   0x4   :  { %16 = vsyncpa [#allocation5], 0  ;;  %s1177_s24 = smov [#allocation6]  }
   0x5   :  { %s32_s25 = sshll.u32 %s1177_s24, 4  ;;  %s33_s25 = int_to_ptr.vmem [resolvable:$true] %s32_s25 }
   0x6   :  { %s1035_s26 = scalar_lea.vmem %s33_s25, 1024  ;;  %p1040_p1 = scmp.lt.s32.totalorder %s33_s25, %s33_s25 }
   0x7   :  { %p1036_p0 = scmp.ne.s32.totalorder %s33_s25, %s1035_s26  ;;  %p1041_p2 = scmp.lt.s32.totalorder %s1035_s26, %s1035_s26 }
   0x9   :  { %p1042_p3 = por %p1041_p2, %p1040_p1 }
   0xb   :  { %p1043_p4 = pnand %p1042_p3, %p1036_p0 }
   0xd   :  { %1046 = shalt.err (!%p1043_p4)
}
   0xe   :  { %s1178_s27 = smov 128   ;;  %s1179_s28 = smov 8  }
   0xf   :  { %38 = dma.hbm_to_vmem [thread:$0]  %s1436_s1, 1024, %s33_s25, [#allocation7], %s1178_s27, %s1178_s27, %s1179_s28  }
  0x10   :  { %s1180_s8 = smov [#allocation9]   ;;  %s1181_s10 = smov [#allocation3]  }
  0x11   :  { %s55_s9 = sshll.u32 %s1180_s8, 4  ;;  %s23_s11 = sshll.u32 %s1181_s10, 4  ;;  %s56_s9 = int_to_ptr.vmem [resolvable:$true] %s55_s9  ;;  %s24_s11 = int_to_ptr.vmem [resolvable:$true] %s23_s11 }
  0x12   :  { %s1055_s12 = scalar_lea.vmem %s56_s9, 128  ;;  %p1060_p6 = scmp.lt.s32.totalorder %s56_s9, %s56_s9 }
  0x13   :  { %p1056_p5 = scmp.ne.s32.totalorder %s56_s9, %s1055_s12  ;;  %p1061_p7 = scmp.lt.s32.totalorder %s1055_s12, %s1055_s12 }
  0x15   :  { %p1062_p8 = por %p1061_p7, %p1060_p6 }
  0x17   :  { %p1063_p9 = pnand %p1062_p8, %p1056_p5 }
  0x19   :  { %1066 = shalt.err (!%p1063_p9)
}
  0x1a   :  { %58 = dma.hbm_to_vmem [thread:$0]  %s1438_s3, 128, %s56_s9, [#allocation10]  }
  0x1b   :  { %s1075_s15 = scalar_lea.vmem %s24_s11, 128  ;;  %p1080_p11 = scmp.lt.s32.totalorder %s24_s11, %s24_s11 }
  0x1c   :  { %p1076_p10 = scmp.ne.s32.totalorder %s24_s11, %s1075_s15  ;;  %p1081_p12 = scmp.lt.s32.totalorder %s1075_s15, %s1075_s15 }
  0x1e   :  { %p1082_p13 = por %p1081_p12, %p1080_p11 }
  0x20   :  { %p1083_p0 = pnand %p1082_p13, %p1076_p10 }
  0x22   :  { %1086 = shalt.err (!%p1083_p0)
}
  0x23   :  { %26 = dma.hbm_to_vmem [thread:$0]  %s1435_s0, 128, %s24_s11, [#allocation4]  }
  0x24   :  { %s1182_s17 = smov [#allocation8]   ;;  %s1183_s19 = smov [#allocation11]  }
  0x25   :  { %s45_s18 = sshll.u32 %s1182_s17, 4  ;;  %s65_s20 = sshll.u32 %s1183_s19, 4  ;;  %s46_s18 = int_to_ptr.vmem [resolvable:$true] %s45_s18  ;;  %s66_s20 = int_to_ptr.vmem [resolvable:$true] %s65_s20 }
  0x26   :  { %s1095_s21 = scalar_lea.vmem %s46_s18, 128  ;;  %p1100_p2 = scmp.lt.s32.totalorder %s46_s18, %s46_s18 }
  0x27   :  { %p1096_p1 = scmp.ne.s32.totalorder %s46_s18, %s1095_s21  ;;  %p1101_p3 = scmp.lt.s32.totalorder %s1095_s21, %s1095_s21 }
  0x29   :  { %p1102_p4 = por %p1101_p3, %p1100_p2 }
  0x2b   :  { %p1103_p5 = pnand %p1102_p4, %p1096_p1 }
  0x2d   :  { %1106 = shalt.err (!%p1103_p5)
}
  0x2e   :  { %48 = dma.hbm_to_vmem [thread:$0]  %s1437_s2, 128, %s46_s18, [#allocation7]  }
  0x2f   :  { %s1115_s23 = scalar_lea.vmem %s66_s20, 128  ;;  %p1120_p7 = scmp.lt.s32.totalorder %s66_s20, %s66_s20 }
  0x30   :  { %p1116_p6 = scmp.ne.s32.totalorder %s66_s20, %s1115_s23  ;;  %p1121_p8 = scmp.lt.s32.totalorder %s1115_s23, %s1115_s23 }
  0x32   :  { %p1122_p9 = por %p1121_p8, %p1120_p7 }
  0x34   :  { %p1123_p10 = pnand %p1122_p9, %p1116_p6 }
  0x36   :  { %1126 = shalt.err (!%p1123_p10)
}
  0x37   :  { %68 = dma.hbm_to_vmem [thread:$0]  %s1439_s4, 128, %s66_s20, [#allocation10]  }
  0x38   :  { %s1184_s25 = smov [#allocation12]  }
  0x39   :  { %s74_s26 = sshll.u32 %s1184_s25, 4  ;;  %s75_s26 = int_to_ptr.vmem [resolvable:$true] %s74_s26 }
  0x3a   :  { %s1135_s29 = scalar_lea.vmem %s75_s26, 1024  ;;  %p1140_p12 = scmp.lt.s32.totalorder %s75_s26, %s75_s26 }
  0x3b   :  { %p1136_p11 = scmp.ne.s32.totalorder %s75_s26, %s1135_s29  ;;  %p1141_p13 = scmp.lt.s32.totalorder %s1135_s29, %s1135_s29 }
  0x3d   :  { %p1142_p0 = por %p1141_p13, %p1140_p12 }
  0x3f   :  { %p1143_p1 = pnand %p1142_p0, %p1136_p11 }
  0x41   :  { %1146 = shalt.err (!%p1143_p1)
}
  0x42   :  { %80 = dma.hbm_to_vmem [thread:$0]  %s1440_s5, 1024, %s75_s26, [#allocation13], %s1178_s27, %s1178_s27, %s1179_s28  }
  0x43   :  { %1167 = dma.done.wait [#allocation4], 128  }
  0x44   :  { %1168 = vsyncadd [#allocation4], 4294967168 }
  0x45   :  { %1169 = dma.done.wait [#allocation7], 1152  }
  0x46   :  { %1170 = vsyncadd [#allocation7], 4294966144 }
  0x47   :  { %1171 = dma.done.wait [#allocation10], 256  }
  0x48   :  { %1172 = vsyncadd [#allocation10], 4294967040 }
  0x49   :  { %1173 = dma.done.wait [#allocation13], 1024  }
  0x4a   :  { %1174 = vsyncadd [#allocation13], 4294966272  ;;  %v1185_v0 = vmov 0   ;;  %v1254_v1 = vld [vmem:[#allocation6 + $0x34] ss:$8 sps:$4 sm:$0xff]   ;;  %vm155_vm0 = vcmask 523264  }
  0x4b   :  { %191 = vmatprep.mubr.bf16.mxu1 %v1185_v0  ;;  %327 = vmatprep.mubr.bf16.mxu0 %v1185_v0  ;;  %v1256_v2 = vld [vmem:[#allocation6 + $0x30] ss:$8 sps:$4 sm:$0xff]   ;;  %v1259_v3 = vld [vmem:[#allocation6 + $0x24] ss:$8 sps:$4 sm:$0xff]   ;;  %v1263_v4 = vld [vmem:[#allocation6 + $0x20] ss:$8 sps:$4 sm:$0xff]  }
  0x4c   :  { %167 = vmatprep.subr.bf16.mxu1 %v1254_v1  ;;  %303 = vmatprep.subr.bf16.mxu0 %v1254_v1  ;;  %v1267_v5 = vld [vmem:[#allocation6 + $0x14] ss:$8 sps:$4 sm:$0xff]   ;;  %v1271_v6 = vld [vmem:[#allocation6 + $0x10] ss:$8 sps:$4 sm:$0xff]   ;;  %v1275_v7 = vld [vmem:[#allocation6 + $0x4] ss:$8 sps:$4 sm:$0xff]  }
  0x4d   :  { %168 = vmatpush1.bf16.msra.mxu1 %v1256_v2  ;;  %304 = vmatpush1.bf16.msra.mxu0 %v1256_v2  ;;  %v1279_v8 = vld [vmem:[#allocation6] ss:$8 sps:$4 sm:$0xff]   ;;  %v113_v9 = vld [vmem:[#allocation3] sm:$0xff]  ;;  %v1301_v20 = vld [vmem:[#allocation11] sm:$0xff]  ;;  %s1186_s4 = smov 64  }
  0x4e   :  { %169 = vmatprep.subr.bf16.mxu1 %v1259_v3  ;;  %305 = vmatprep.subr.bf16.mxu0 %v1259_v3  ;;  %v114_v10 = vpack.c.bf16 %v113_v9, %v113_v9  ;;  %v1298_v11 = vld [vmem:[#allocation8] sm:$0xff]  ;;  %v1304_v23 = vld [vmem:[#allocation9] sm:$0xff] }
  0x51   :  { %170 = vmatpush1.bf16.msra.mxu1 %v1263_v4  ;;  %306 = vmatpush1.bf16.msra.mxu0 %v1263_v4 }
  0x52   :  { %171 = vmatprep.subr.bf16.mxu1 %v1267_v5  ;;  %307 = vmatprep.subr.bf16.mxu0 %v1267_v5 }
  0x55   :  { %172 = vmatpush1.bf16.msra.mxu1 %v1271_v6  ;;  %308 = vmatpush1.bf16.msra.mxu0 %v1271_v6 }
  0x56   :  { %173 = vmatprep.subr.bf16.mxu1 %v1275_v7  ;;  %309 = vmatprep.subr.bf16.mxu0 %v1275_v7 }
  0x59   :  { %174 = vmatpush1.bf16.msra.mxu1 %v1279_v8  ;;  %310 = vmatpush1.bf16.msra.mxu0 %v1279_v8 }
  0x5a   :  { %235 = vmatprep.subr.bf16.mxu1 %v1254_v1  ;;  %439 = vmatprep.subr.bf16.mxu0 %v1254_v1 }
  0x5c   :  { %887 = vmatmul.mubr.msk.bf16.vlgmr.msra.gmra.mxu1 %vm155_vm0, %v114_v10 }
  0x5d   :  { %236 = vmatpush1.bf16.msra.mxu1 %v1256_v2  ;;  %259 = vmatprep.mubr.bf16.mxu1 %v1185_v0 }
  0x5e   :  { %237 = vmatprep.subr.bf16.mxu1 %v1259_v3 }
  0x61   :  { %238 = vmatpush1.bf16.msra.mxu1 %v1263_v4 }
  0x62   :  { %239 = vmatprep.subr.bf16.mxu1 %v1267_v5 }
  0x65   :  { %240 = vmatpush1.bf16.msra.mxu1 %v1271_v6 }
  0x66   :  { %241 = vmatprep.subr.bf16.mxu1 %v1275_v7 }
  0x69   :  { %242 = vmatpush1.bf16.msra.mxu1 %v1279_v8 }
  0x6a   :  { %371 = vmatprep.subr.bf16.mxu1 %v1254_v1 }
 0x11c   :  { %v193_v12 = vpop.f32.mrf.mxu1 }
 0x11d   :  { %v200_v13 = vadd.f32 %v193_v12, %v1298_v11 }
 0x11e   :  { %v195_v14 = vpop.f32.mrf.mxu1 }
 0x11f   :  { %v888_v15 = vmul.f32 -1.442695, %v200_v13  ;;  %v207_v21 = vadd.f32 %v195_v14, %v1301_v20 }
 0x120   :  { %v197_v16 = vpop.f32.mrf.mxu1 }
 0x121   :  { %979 = vpow2.f32 %v888_v15 }
 0x122   :  { %v198_v17 = vpop.f32.mrf.mxu1 }
 0x12e   :  { %v980_v18 = vpop.eup %979 }
 0x12f   :  { %v204_v19 = vadd.f32 1.0, %v980_v18 }
 0x131   :  { %981 = vrcp.f32 %v204_v19 }
 0x13e   :  { %v982_v22 = vpop.eup %981 }
 0x13f   :  { %v208_v24 = vmul.f32 %v982_v22, %v207_v21 }
 0x141   :  { %v209_v25 = vadd.f32 %v208_v24, %v1304_v23 }
 0x143   :  { %983 = vtanh.f32 %v209_v25 }
 0x150   :  { %v984_v26 = vpop.eup %983 }
 0x151   :  { %v211_v27 = vsub.f32 %v113_v9, %v984_v26 }
 0x153   :  { %213 = vrot.lane.b32.xlu0 %v211_v27, %s1186_s4 }
 0x1c5   :  { %v214_v28 = vpop.permute.xlu0 %213 }
 0x1c6   :  { %v216_v29 = vmul.f32 %v982_v22, %v214_v28 }
 0x1c8   :  { %218 = vrot.lane.b32.xlu0 %v216_v29, %s1186_s4 }
 0x23a   :  { %v219_v30 = vpop.permute.xlu0 %218 }
 0x23b   :  { %v221_v31 = vadd.f32 %v984_v26, %v219_v30 }
 0x23d   :  { %222 = vst.msk [vmem:[#allocation2] sm:$0xff] %vm155_vm0, %v221_v31  ;;  %v223_v32 = vpack.c.bf16 %v221_v31, %v221_v31 }
 0x23f   :  { %889 = vmatmul.mubr.msk.bf16.vlgmr.msra.gmra.mxu1 %vm155_vm0, %v223_v32 }
 0x240   :  { %372 = vmatpush1.bf16.msra.mxu1 %v1256_v2  ;;  %395 = vmatprep.mubr.bf16.mxu1 %v1185_v0 }
 0x241   :  { %373 = vmatprep.subr.bf16.mxu1 %v1259_v3 }
 0x244   :  { %374 = vmatpush1.bf16.msra.mxu1 %v1263_v4 }
 0x245   :  { %375 = vmatprep.subr.bf16.mxu1 %v1267_v5 }
 0x248   :  { %376 = vmatpush1.bf16.msra.mxu1 %v1271_v6 }
 0x249   :  { %377 = vmatprep.subr.bf16.mxu1 %v1275_v7 }
 0x24c   :  { %378 = vmatpush1.bf16.msra.mxu1 %v1279_v8 }
 0x24d   :  { %507 = vmatprep.subr.bf16.mxu1 %v1254_v1 }
 0x2ff   :  { %v261_v33 = vpop.f32.mrf.mxu1 }
 0x300   :  { %v268_v34 = vadd.f32 %v261_v33, %v1298_v11 }
 0x301   :  { %v263_v35 = vpop.f32.mrf.mxu1 }
 0x302   :  { %v890_v36 = vmul.f32 -1.442695, %v268_v34  ;;  %v275_v41 = vadd.f32 %v263_v35, %v1301_v20 }
 0x303   :  { %v265_v37 = vpop.f32.mrf.mxu1 }
 0x304   :  { %985 = vpow2.f32 %v890_v36 }
 0x305   :  { %v266_v38 = vpop.f32.mrf.mxu1 }
 0x311   :  { %v986_v39 = vpop.eup %985 }
 0x312   :  { %v272_v40 = vadd.f32 1.0, %v986_v39 }
 0x314   :  { %987 = vrcp.f32 %v272_v40 }
 0x321   :  { %v988_v42 = vpop.eup %987 }
 0x322   :  { %v276_v43 = vmul.f32 %v988_v42, %v275_v41 }
 0x324   :  { %v277_v44 = vadd.f32 %v276_v43, %v1304_v23 }
 0x326   :  { %989 = vtanh.f32 %v277_v44 }
 0x333   :  { %v990_v45 = vpop.eup %989 }
 0x334   :  { %v279_v46 = vsub.f32 %v221_v31, %v990_v45 }
 0x336   :  { %281 = vrot.lane.b32.xlu1 %v279_v46, %s1186_s4 }
 0x3a8   :  { %v282_v47 = vpop.permute.xlu1 %281 }
 0x3a9   :  { %v284_v48 = vmul.f32 %v988_v42, %v282_v47 }
 0x3ab   :  { %286 = vrot.lane.b32.xlu1 %v284_v48, %s1186_s4 }
 0x41d   :  { %v287_v49 = vpop.permute.xlu1 %286 }
 0x41e   :  { %v289_v50 = vadd.f32 %v990_v45, %v287_v49 }
 0x420   :  { %290 = vst.msk [vmem:[#allocation2 + $0x8] sm:$0xff] %vm155_vm0, %v289_v50  ;;  %v291_v51 = vpack.c.bf16 %v289_v50, %v289_v50 }
 0x422   :  { %891 = vmatmul.mubr.msk.bf16.vlgmr.msra.gmra.mxu0 %vm155_vm0, %v291_v51 }
 0x423   :  { %440 = vmatpush1.bf16.msra.mxu0 %v1256_v2  ;;  %463 = vmatprep.mubr.bf16.mxu0 %v1185_v0 }
 0x424   :  { %441 = vmatprep.subr.bf16.mxu0 %v1259_v3 }
 0x427   :  { %442 = vmatpush1.bf16.msra.mxu0 %v1263_v4 }
 0x428   :  { %443 = vmatprep.subr.bf16.mxu0 %v1267_v5 }
 0x42b   :  { %444 = vmatpush1.bf16.msra.mxu0 %v1271_v6 }
 0x42c   :  { %445 = vmatprep.subr.bf16.mxu0 %v1275_v7 }
 0x42f   :  { %446 = vmatpush1.bf16.msra.mxu0 %v1279_v8 }
 0x430   :  { %575 = vmatprep.subr.bf16.mxu0 %v1254_v1 }
 0x4e2   :  { %v329_v52 = vpop.f32.mrf.mxu0 }
 0x4e3   :  { %v336_v53 = vadd.f32 %v329_v52, %v1298_v11 }
 0x4e4   :  { %v331_v54 = vpop.f32.mrf.mxu0 }
 0x4e5   :  { %v892_v55 = vmul.f32 -1.442695, %v336_v53  ;;  %v343_v60 = vadd.f32 %v331_v54, %v1301_v20 }
 0x4e6   :  { %v333_v56 = vpop.f32.mrf.mxu0 }
 0x4e7   :  { %991 = vpow2.f32 %v892_v55 }
 0x4e8   :  { %v334_v57 = vpop.f32.mrf.mxu0 }
 0x4f4   :  { %v992_v58 = vpop.eup %991 }
 0x4f5   :  { %v340_v59 = vadd.f32 1.0, %v992_v58 }
 0x4f7   :  { %993 = vrcp.f32 %v340_v59 }
 0x504   :  { %v994_v61 = vpop.eup %993 }
 0x505   :  { %v344_v62 = vmul.f32 %v994_v61, %v343_v60 }
 0x507   :  { %v345_v63 = vadd.f32 %v344_v62, %v1304_v23  ;;  %v714_v62 = vld [vmem:[#allocation12 + $0x38] sm:$0xff] }
 0x509   :  { %995 = vtanh.f32 %v345_v63 }
 0x516   :  { %v996_v9 = vpop.eup %995 }
 0x517   :  { %v347_v10 = vsub.f32 %v289_v50, %v996_v9 }
 0x519   :  { %349 = vrot.lane.b32.xlu0 %v347_v10, %s1186_s4 }
 0x58b   :  { %v350_v12 = vpop.permute.xlu0 %349 }
 0x58c   :  { %v352_v13 = vmul.f32 %v994_v61, %v350_v12 }
 0x58e   :  { %354 = vrot.lane.b32.xlu1 %v352_v13, %s1186_s4 }
 0x600   :  { %v355_v14 = vpop.permute.xlu1 %354 }
 0x601   :  { %v357_v15 = vadd.f32 %v996_v9, %v355_v14  ;;  %v713_v14 = vld [vmem:[#allocation12 + $0x30] sm:$0xff] }
 0x603   :  { %358 = vst.msk [vmem:[#allocation2 + $0x10] sm:$0xff] %vm155_vm0, %v357_v15  ;;  %v359_v16 = vpack.c.bf16 %v357_v15, %v357_v15 }
 0x605   :  { %893 = vmatmul.mubr.msk.bf16.vlgmr.msra.gmra.mxu1 %vm155_vm0, %v359_v16  ;;  %v712_v16 = vld [vmem:[#allocation12 + $0x28] sm:$0xff] }
 0x606   :  { %508 = vmatpush1.bf16.msra.mxu1 %v1256_v2  ;;  %531 = vmatprep.mubr.bf16.mxu1 %v1185_v0 }
 0x607   :  { %509 = vmatprep.subr.bf16.mxu1 %v1259_v3 }
 0x60a   :  { %510 = vmatpush1.bf16.msra.mxu1 %v1263_v4 }
 0x60b   :  { %511 = vmatprep.subr.bf16.mxu1 %v1267_v5 }
 0x60e   :  { %512 = vmatpush1.bf16.msra.mxu1 %v1271_v6 }
 0x60f   :  { %513 = vmatprep.subr.bf16.mxu1 %v1275_v7 }
 0x612   :  { %514 = vmatpush1.bf16.msra.mxu1 %v1279_v8 }
 0x613   :  { %643 = vmatprep.subr.bf16.mxu1 %v1254_v1 }
 0x6c5   :  { %v397_v17 = vpop.f32.mrf.mxu1 }
 0x6c6   :  { %v404_v18 = vadd.f32 %v397_v17, %v1298_v11  ;;  %v711_v17 = vld [vmem:[#allocation12 + $0x20] sm:$0xff] }
 0x6c7   :  { %v399_v19 = vpop.f32.mrf.mxu1 }
 0x6c8   :  { %v894_v21 = vmul.f32 -1.442695, %v404_v18  ;;  %v411_v27 = vadd.f32 %v399_v19, %v1301_v20  ;;  %v710_v18 = vld [vmem:[#allocation12 + $0x18] sm:$0xff]  ;;  %v709_v19 = vld [vmem:[#allocation12 + $0x10] sm:$0xff] }
 0x6c9   :  { %v401_v22 = vpop.f32.mrf.mxu1 }
 0x6ca   :  { %997 = vpow2.f32 %v894_v21  ;;  %v708_v21 = vld [vmem:[#allocation12 + $0x8] sm:$0xff]  ;;  %v707_v22 = vld [vmem:[#allocation12] sm:$0xff] }
 0x6cb   :  { %v402_v24 = vpop.f32.mrf.mxu1 }
 0x6cc   :  { %v700_v24 = vld [vmem:[#allocation2 + $0x8] sm:$0xff] }
 0x6d7   :  { %v998_v25 = vpop.eup %997 }
 0x6d8   :  { %v408_v26 = vadd.f32 1.0, %v998_v25  ;;  %v701_v25 = vld [vmem:[#allocation2 + $0x10] sm:$0xff] }
 0x6da   :  { %999 = vrcp.f32 %v408_v26 }
 0x6e7   :  { %v1000_v28 = vpop.eup %999 }
 0x6e8   :  { %v412_v29 = vmul.f32 %v1000_v28, %v411_v27 }
 0x6ea   :  { %v413_v30 = vadd.f32 %v412_v29, %v1304_v23 }
 0x6ec   :  { %1001 = vtanh.f32 %v413_v30 }
 0x6f9   :  { %v1002_v31 = vpop.eup %1001 }
 0x6fa   :  { %v415_v1 = vsub.f32 %v357_v15, %v1002_v31  ;;  %v699_v15 = vld [vmem:[#allocation2] sm:$0xff] }
 0x6fc   :  { %417 = vrot.lane.b32.xlu0 %v415_v1, %s1186_s4 }
 0x76e   :  { %v418_v32 = vpop.permute.xlu0 %417 }
 0x76f   :  { %v420_v33 = vmul.f32 %v1000_v28, %v418_v32 }
 0x771   :  { %422 = vrot.lane.b32.xlu1 %v420_v33, %s1186_s4 }
 0x7e3   :  { %v423_v34 = vpop.permute.xlu1 %422 }
 0x7e4   :  { %v425_v35 = vadd.f32 %v1002_v31, %v423_v34  ;;  %v1404_v34 = vld [vmem:[%s1441_s6] ss:$0 sm:$0xff]  ;;  %s1187_s6 = smov [#allocation14]  }
 0x7e5   :  { %s864_s9 = sshll.u32 %s1187_s6, 4  ;;  %s865_s9 = int_to_ptr.vmem [resolvable:$true] %s864_s9 }
 0x7e6   :  { %426 = vst.msk [vmem:[#allocation2 + $0x18] sm:$0xff] %vm155_vm0, %v425_v35  ;;  %v427_v36 = vpack.c.bf16 %v425_v35, %v425_v35  ;;  %s1147_s10 = scalar_lea.vmem %s865_s9, 1024  ;;  %p1152_p3 = scmp.lt.s32.totalorder %s865_s9, %s865_s9 }
 0x7e7   :  { %p1148_p2 = scmp.ne.s32.totalorder %s865_s9, %s1147_s10  ;;  %p1153_p4 = scmp.lt.s32.totalorder %s1147_s10, %s1147_s10 }
 0x7e8   :  { %895 = vmatmul.mubr.msk.bf16.vlgmr.msra.gmra.mxu0 %vm155_vm0, %v427_v36 }
 0x7e9   :  { %576 = vmatpush1.bf16.msra.mxu0 %v1256_v2  ;;  %599 = vmatprep.mubr.bf16.mxu0 %v1185_v0  ;;  %p1154_p5 = por %p1153_p4, %p1152_p3 }
 0x7ea   :  { %577 = vmatprep.subr.bf16.mxu0 %v1259_v3 }
 0x7eb   :  { %p1155_p6 = pnand %p1154_p5, %p1148_p2 }
 0x7ed   :  { %578 = vmatpush1.bf16.msra.mxu0 %v1263_v4  ;;  %v702_v26 = vld [vmem:[#allocation2 + $0x18] sm:$0xff] }
 0x7ee   :  { %579 = vmatprep.subr.bf16.mxu0 %v1267_v5 }
 0x7f1   :  { %580 = vmatpush1.bf16.msra.mxu0 %v1271_v6 }
 0x7f2   :  { %581 = vmatprep.subr.bf16.mxu0 %v1275_v7 }
 0x7f5   :  { %582 = vmatpush1.bf16.msra.mxu0 %v1279_v8 }
 0x7f6   :  { %928 = vmatprep.subr.mxu0 %v714_v62 }
 0x8a8   :  { %v465_v37 = vpop.f32.mrf.mxu0 }
 0x8a9   :  { %v472_v38 = vadd.f32 %v465_v37, %v1298_v11 }
 0x8aa   :  { %v467_v39 = vpop.f32.mrf.mxu0 }
 0x8ab   :  { %v896_v40 = vmul.f32 -1.442695, %v472_v38  ;;  %v479_v45 = vadd.f32 %v467_v39, %v1301_v20 }
 0x8ac   :  { %v469_v41 = vpop.f32.mrf.mxu0 }
 0x8ad   :  { %1003 = vpow2.f32 %v896_v40 }
 0x8ae   :  { %v470_v42 = vpop.f32.mrf.mxu0 }
 0x8ba   :  { %v1004_v43 = vpop.eup %1003 }
 0x8bb   :  { %v476_v44 = vadd.f32 1.0, %v1004_v43 }
 0x8bd   :  { %1005 = vrcp.f32 %v476_v44 }
 0x8ca   :  { %v1006_v46 = vpop.eup %1005 }
 0x8cb   :  { %v480_v47 = vmul.f32 %v1006_v46, %v479_v45 }
 0x8cd   :  { %v481_v48 = vadd.f32 %v480_v47, %v1304_v23 }
 0x8cf   :  { %1007 = vtanh.f32 %v481_v48 }
 0x8dc   :  { %v1008_v49 = vpop.eup %1007 }
 0x8dd   :  { %v483_v50 = vsub.f32 %v425_v35, %v1008_v49 }
 0x8df   :  { %485 = vrot.lane.b32.xlu0 %v483_v50, %s1186_s4 }
 0x951   :  { %v486_v51 = vpop.permute.xlu0 %485 }
 0x952   :  { %v488_v52 = vmul.f32 %v1006_v46, %v486_v51 }
 0x954   :  { %490 = vrot.lane.b32.xlu1 %v488_v52, %s1186_s4 }
 0x9c6   :  { %v491_v53 = vpop.permute.xlu1 %490 }
 0x9c7   :  { %v493_v54 = vadd.f32 %v1008_v49, %v491_v53 }
 0x9c9   :  { %494 = vst.msk [vmem:[#allocation2 + $0x20] sm:$0xff] %vm155_vm0, %v493_v54  ;;  %v495_v55 = vpack.c.bf16 %v493_v54, %v493_v54 }
 0x9cb   :  { %897 = vmatmul.mubr.msk.bf16.vlgmr.msra.gmra.mxu1 %vm155_vm0, %v495_v55 }
 0x9cc   :  { %644 = vmatpush1.bf16.msra.mxu1 %v1256_v2  ;;  %667 = vmatprep.mubr.bf16.mxu1 %v1185_v0 }
 0x9cd   :  { %645 = vmatprep.subr.bf16.mxu1 %v1259_v3 }
 0x9d0   :  { %646 = vmatpush1.bf16.msra.mxu1 %v1263_v4  ;;  %v703_v27 = vld [vmem:[#allocation2 + $0x20] sm:$0xff] }
 0x9d1   :  { %647 = vmatprep.subr.bf16.mxu1 %v1267_v5 }
 0x9d4   :  { %648 = vmatpush1.bf16.msra.mxu1 %v1271_v6 }
 0x9d5   :  { %649 = vmatprep.subr.bf16.mxu1 %v1275_v7 }
 0x9d8   :  { %650 = vmatpush1.bf16.msra.mxu1 %v1279_v8 }
 0xa8b   :  { %v533_v56 = vpop.f32.mrf.mxu1 }
 0xa8c   :  { %v540_v57 = vadd.f32 %v533_v56, %v1298_v11 }
 0xa8d   :  { %v535_v58 = vpop.f32.mrf.mxu1 }
 0xa8e   :  { %v898_v59 = vmul.f32 -1.442695, %v540_v57  ;;  %v547_v4 = vadd.f32 %v535_v58, %v1301_v20 }
 0xa8f   :  { %v537_v2 = vpop.f32.mrf.mxu1 }
 0xa90   :  { %1009 = vpow2.f32 %v898_v59 }
 0xa91   :  { %v538_v0 = vpop.f32.mrf.mxu1 }
 0xa9d   :  { %v1010_v60 = vpop.eup %1009 }
 0xa9e   :  { %v544_v3 = vadd.f32 1.0, %v1010_v60 }
 0xaa0   :  { %1011 = vrcp.f32 %v544_v3 }
 0xaad   :  { %v1012_v5 = vpop.eup %1011 }
 0xaae   :  { %v548_v61 = vmul.f32 %v1012_v5, %v547_v4 }
 0xab0   :  { %v549_v6 = vadd.f32 %v548_v61, %v1304_v23 }
 0xab2   :  { %1013 = vtanh.f32 %v549_v6 }
 0xabf   :  { %v1014_v7 = vpop.eup %1013 }
 0xac0   :  { %v551_v8 = vsub.f32 %v493_v54, %v1014_v7 }
 0xac2   :  { %553 = vrot.lane.b32.xlu0 %v551_v8, %s1186_s4 }
 0xb34   :  { %v554_v63 = vpop.permute.xlu0 %553 }
 0xb35   :  { %v556_v9 = vmul.f32 %v1012_v5, %v554_v63 }
 0xb37   :  { %558 = vrot.lane.b32.xlu1 %v556_v9, %s1186_s4 }
 0xba9   :  { %v559_v10 = vpop.permute.xlu1 %558 }
 0xbaa   :  { %v1387_v12 = vadd.f32 %v1014_v7, %v559_v10 }
 0xbac   :  { %562 = vst.msk [vmem:[#allocation2 + $0x28] sm:$0xff] %vm155_vm0, %v1387_v12  ;;  %v563_v13 = vpack.c.bf16 %v1387_v12, %v1387_v12 }
 0xbae   :  { %899 = vmatmul.mubr.msk.bf16.vlgmr.msra.gmra.mxu0 %vm155_vm0, %v563_v13 }
 0xbaf   :  { %929 = vmatpush3.msra.mxu0 %v714_v62  ;;  %944 = vmatprep.mubr.msk.f32.mxu0 %vm155_vm0, %v699_v15 }
 0xbb0   :  { %930 = vmatprep.subr.mxu0 %v713_v14 }
 0xbb1   :  { %931 = vmatpush3.msra.mxu0 %v713_v14 }
 0xbb2   :  { %932 = vmatprep.subr.mxu0 %v712_v16 }
 0xbb3   :  { %933 = vmatpush3.msra.mxu0 %v712_v16  ;;  %v704_v28 = vld [vmem:[#allocation2 + $0x28] sm:$0xff] }
 0xbb4   :  { %934 = vmatprep.subr.mxu0 %v711_v17 }
 0xbb5   :  { %935 = vmatpush3.msra.mxu0 %v711_v17 }
 0xbb6   :  { %936 = vmatprep.subr.mxu0 %v710_v18 }
 0xbb7   :  { %937 = vmatpush3.msra.mxu0 %v710_v18 }
 0xbb8   :  { %938 = vmatprep.subr.mxu0 %v709_v19 }
 0xbb9   :  { %939 = vmatpush3.msra.mxu0 %v709_v19 }
 0xbba   :  { %940 = vmatprep.subr.mxu0 %v708_v21 }
 0xbbb   :  { %941 = vmatpush3.msra.mxu0 %v708_v21 }
 0xbbc   :  { %942 = vmatprep.subr.mxu0 %v707_v22 }
 0xbbd   :  { %943 = vmatpush3.msra.mxu0 %v707_v22 }
 0xbbe   :  { %945 = vmatmul.mubr.msk.f32.vlgmr.msra.gmra.mxu0 %vm155_vm0, %v700_v24 }
 0xbbf   :  { %947 = vmatprep.mubr.msk.f32.mxu0 %vm155_vm0, %v701_v25 }
 0xbc2   :  { %948 = vmatmul.mubr.msk.f32.gmra.mxu0 %vm155_vm0, %v702_v26 }
 0xbc3   :  { %950 = vmatprep.mubr.msk.f32.mxu0 %vm155_vm0, %v703_v27 }
 0xbc6   :  { %951 = vmatmul.mubr.msk.f32.gmra.mxu0 %vm155_vm0, %v704_v28 }
 0xc6e   :  { %v601_v29 = vpop.f32.mrf.mxu0 }
 0xc6f   :  { %v608_v30 = vadd.f32 %v601_v29, %v1298_v11 }
 0xc70   :  { %v603_v31 = vpop.f32.mrf.mxu0 }
 0xc71   :  { %v900_v1 = vmul.f32 -1.442695, %v608_v30  ;;  %v615_v49 = vadd.f32 %v603_v31, %v1301_v20 }
 0xc72   :  { %v605_v32 = vpop.f32.mrf.mxu0 }
 0xc73   :  { %1015 = vpow2.f32 %v900_v1 }
 0xc74   :  { %v606_v33 = vpop.f32.mrf.mxu0 }
 0xc7e   :  { %v946_v35 = vpop.f32.mrf.mxu0 }
 0xc7f   :  { %v818_v36 = vadd.f32 %v946_v35, %v1404_v34 }
 0xc80   :  { %v1016_v37 = vpop.eup %1015  ;;  %v812_v38 = vpop.f32.mrf.mxu0 }
 0xc81   :  { %v612_v39 = vadd.f32 1.0, %v1016_v37  ;;  %852 = vst [vmem:[#allocation14 + $0x8] sm:$0xff] %v818_v36  ;;  %v813_v40 = vadd.f32 %v1404_v34, %v812_v38 }
 0xc82   :  { %v949_v41 = vpop.f32.mrf.mxu0 }
 0xc83   :  { %1017 = vrcp.f32 %v612_v39  ;;  %851 = vst [vmem:[#allocation14] sm:$0xff] %v813_v40  ;;  %v828_v42 = vadd.f32 %v949_v41, %v1404_v34 }
 0xc84   :  { %v822_v43 = vpop.f32.mrf.mxu0 }
 0xc85   :  { %854 = vst [vmem:[#allocation14 + $0x18] sm:$0xff] %v828_v42  ;;  %v823_v44 = vadd.f32 %v1404_v34, %v822_v43 }
 0xc86   :  { %v952_v45 = vpop.f32.mrf.mxu0 }
 0xc87   :  { %853 = vst [vmem:[#allocation14 + $0x10] sm:$0xff] %v823_v44  ;;  %v838_v46 = vadd.f32 %v952_v45, %v1404_v34 }
 0xc88   :  { %v832_v47 = vpop.f32.mrf.mxu0 }
 0xc89   :  { %856 = vst [vmem:[#allocation14 + $0x28] sm:$0xff] %v838_v46  ;;  %v833_v48 = vadd.f32 %v1404_v34, %v832_v47 }
 0xc8b   :  { %855 = vst [vmem:[#allocation14 + $0x20] sm:$0xff] %v833_v48 }
 0xc90   :  { %v1018_v50 = vpop.eup %1017 }
 0xc91   :  { %v616_v51 = vmul.f32 %v1018_v50, %v615_v49 }
 0xc93   :  { %v617_v52 = vadd.f32 %v616_v51, %v1304_v23 }
 0xc95   :  { %1019 = vtanh.f32 %v617_v52 }
 0xca2   :  { %v1020_v53 = vpop.eup %1019 }
 0xca3   :  { %v619_v54 = vsub.f32 %v1387_v12, %v1020_v53 }
 0xca5   :  { %621 = vrot.lane.b32.xlu0 %v619_v54, %s1186_s4 }
 0xd17   :  { %v622_v55 = vpop.permute.xlu0 %621 }
 0xd18   :  { %v624_v56 = vmul.f32 %v1018_v50, %v622_v55 }
 0xd1a   :  { %626 = vrot.lane.b32.xlu1 %v624_v56, %s1186_s4 }
 0xd8c   :  { %v627_v57 = vpop.permute.xlu1 %626 }
 0xd8d   :  { %v629_v58 = vadd.f32 %v1020_v53, %v627_v57 }
 0xd8f   :  { %630 = vst.msk [vmem:[#allocation2 + $0x30] sm:$0xff] %vm155_vm0, %v629_v58  ;;  %v631_v59 = vpack.c.bf16 %v629_v58, %v629_v58 }
 0xd91   :  { %901 = vmatmul.mubr.msk.bf16.vlgmr.msra.gmra.mxu1 %vm155_vm0, %v631_v59 }
 0xd96   :  { %v705_v2 = vld [vmem:[#allocation2 + $0x30] sm:$0xff] }
 0xd97   :  { %953 = vmatprep.mubr.msk.f32.mxu0 %vm155_vm0, %v705_v2 }
 0xe51   :  { %v669_v0 = vpop.f32.mrf.mxu1 }
 0xe52   :  { %v676_v60 = vadd.f32 %v669_v0, %v1298_v11 }
 0xe53   :  { %v671_v3 = vpop.f32.mrf.mxu1 }
 0xe54   :  { %v902_v4 = vmul.f32 -1.442695, %v676_v60  ;;  %v683_v8 = vadd.f32 %v671_v3, %v1301_v20 }
 0xe55   :  { %v673_v5 = vpop.f32.mrf.mxu1 }
 0xe56   :  { %1021 = vpow2.f32 %v902_v4 }
 0xe57   :  { %v674_v61 = vpop.f32.mrf.mxu1 }
 0xe63   :  { %v1022_v6 = vpop.eup %1021 }
 0xe64   :  { %v680_v7 = vadd.f32 1.0, %v1022_v6 }
 0xe66   :  { %1023 = vrcp.f32 %v680_v7 }
 0xe73   :  { %v1024_v62 = vpop.eup %1023 }
 0xe74   :  { %v684_v63 = vmul.f32 %v1024_v62, %v683_v8 }
 0xe76   :  { %v685_v9 = vadd.f32 %v684_v63, %v1304_v23 }
 0xe78   :  { %1025 = vtanh.f32 %v685_v9 }
 0xe85   :  { %v1026_v10 = vpop.eup %1025 }
 0xe86   :  { %v687_v12 = vsub.f32 %v629_v58, %v1026_v10 }
 0xe88   :  { %689 = vrot.lane.b32.xlu0 %v687_v12, %s1186_s4 }
 0xefa   :  { %v690_v11 = vpop.permute.xlu0 %689 }
 0xefb   :  { %v692_v13 = vmul.f32 %v1024_v62, %v690_v11 }
 0xefd   :  { %694 = vrot.lane.b32.xlu1 %v692_v13, %s1186_s4 }
 0xf6f   :  { %v695_v14 = vpop.permute.xlu1 %694 }
 0xf70   :  { %v697_v15 = vadd.f32 %v1026_v10, %v695_v14 }
 0xf72   :  { %698 = vst.msk [vmem:[#allocation2 + $0x38] sm:$0xff] %vm155_vm0, %v697_v15 }
 0xf79   :  { %v706_v16 = vld [vmem:[#allocation2 + $0x38] sm:$0xff] }
 0xf7a   :  { %954 = vmatmul.mubr.msk.f32.gmra.mxu0 %vm155_vm0, %v706_v16 }
0x103a   :  { %v955_v20 = vpop.f32.mrf.mxu0 }
0x103b   :  { %v848_v23 = vadd.f32 %v955_v20, %v1404_v34 }
0x103c   :  { %v842_v17 = vpop.f32.mrf.mxu0 }
0x103d   :  { %858 = vst [vmem:[#allocation14 + $0x38] sm:$0xff] %v848_v23  ;;  %v843_v18 = vadd.f32 %v1404_v34, %v842_v17 }
0x103f   :  { %857 = vst [vmem:[#allocation14 + $0x30] sm:$0xff] %v843_v18 }
0x1040   :  { %1158 = shalt.err (!%p1155_p6)
}
0x1041   :  { %870 = dma.vmem_to_hbm [thread:$0]  %s865_s9, 1024, %s1442_s7, [#allocation5], %s1178_s27, %s1178_s27, %s1179_s28  }
0x1042   :  { %1175 = dma.done.wait [#allocation5], 1024  }
0x1043   :  { %1176 = vsyncadd [#allocation5], 4294966272 }
0x1044   :  { %874 = vsyncpa [#allocation4], 1 }
0x1045   :  { %875 = vsyncpa [#allocation7], 1 }
0x1046   :  { %876 = vsyncpa [#allocation10], 1 }
0x1047   :  { %877 = vsyncpa [#allocation13], 1 }
0x1048   :  { %878 = vsyncpa [#allocation5], 1 }

</bundles_post_ra>
